<compile_context>
chip_gen: v7x
topology: tpu7x:2x2x1
jax: 0.10.0
libtpu: 0.0.40
codegen_flags: <defaults>
</compile_context>

<pallas_src>
import jax
import jax.numpy as jnp
from jax.experimental import pallas as pl
from jax.experimental.pallas import tpu as pltpu

# Synthetic FUNCTION_CONFIG (the original reads these from a config dict).
FUNCTION_CONFIG = {"obs_dim": 16, "n_discrete": 8}
HIDDEN_SIZES = [256, 256, 128]

_NEG = jnp.float32(-1e30)  # additive mask for padded logit lanes


def _round_up(n, m):
    return ((n + m - 1) // m) * m


def _policy_kernel(x_ref, w1_ref, b1_ref, w2_ref, b2_ref, w3_ref, b3_ref,
                   wo_ref, bo_ref, out_ref):
    # Hidden layer 1: Linear + ReLU (bf16 MXU inputs, f32 accumulation/elementwise).
    h = jnp.dot(x_ref[...], w1_ref[...], preferred_element_type=jnp.float32)
    h = jnp.maximum(h + b1_ref[...], 0.0)
    # Hidden layer 2
    h = jnp.dot(h.astype(jnp.bfloat16), w2_ref[...], preferred_element_type=jnp.float32)
    h = jnp.maximum(h + b2_ref[...], 0.0)
    # Hidden layer 3
    h = jnp.dot(h.astype(jnp.bfloat16), w3_ref[...], preferred_element_type=jnp.float32)
    h = jnp.maximum(h + b3_ref[...], 0.0)
    # Output layer, lane-padded to 128 columns. Padded columns have zero weights and a
    # -1e30 bias, so they contribute nothing to the softmax normalization.
    logits = jnp.dot(h.astype(jnp.bfloat16), wo_ref[...],
                     preferred_element_type=jnp.float32) + bo_ref[...]
    # Numerically stable log_softmax along the last axis.
    m = jnp.max(logits, axis=-1, keepdims=True)
    shifted = logits - m
    lse = jnp.log(jnp.sum(jnp.exp(shifted), axis=-1, keepdims=True))
    out_ref[...] = (shifted - lse).astype(out_ref.dtype)


def policy_network_forward(x, params, *, block_batch=512):
    """x: [batch, obs_dim] float32. params: list of (W[in,out], b[1,out]) f32 tuples.

    Returns log-probs [batch, n_discrete] in float32.
    """
    batch, obs_dim = x.shape
    (w1, b1), (w2, b2), (w3, b3), (wo, bo) = params
    n_out = wo.shape[1]

    # --- Lane-dense output path: pad final layer width up to a 128-lane multiple. ---
    n_out_pad = _round_up(max(n_out, 128), 128)
    pad = n_out_pad - n_out
    wo_p = jnp.pad(wo, ((0, 0), (0, pad)))                         # zero weight columns
    bo_p = jnp.pad(bo, ((0, 0), (0, pad)), constant_values=_NEG)   # masked logits

    # --- bf16 MXU inputs (halves weight/x DMA bytes); biases stay f32. ---
    x_bf = x.astype(jnp.bfloat16)
    w1_bf = w1.astype(jnp.bfloat16)
    w2_bf = w2.astype(jnp.bfloat16)
    w3_bf = w3.astype(jnp.bfloat16)
    wo_bf = wo_p.astype(jnp.bfloat16)

    # --- Batch grid: tile rows (multiple of 8 sublanes), pad batch to the tile. ---
    tb = min(block_batch, _round_up(batch, 8))
    batch_pad = _round_up(batch, tb)
    if batch_pad != batch:
        x_bf = jnp.pad(x_bf, ((0, batch_pad - batch), (0, 0)))
    grid = (batch_pad // tb,)

    def const_spec(a):
        # Grid-invariant operand: same block every step -> stays resident in VMEM.
        return pl.BlockSpec(a.shape, lambda i: (0, 0))

    out = pl.pallas_call(
        _policy_kernel,
        out_shape=jax.ShapeDtypeStruct((batch_pad, n_out_pad), jnp.float32),
        grid=grid,
        in_specs=[
            pl.BlockSpec((tb, obs_dim), lambda i: (i, 0)),   # x tile (pipelined)
            const_spec(w1_bf), const_spec(b1),
            const_spec(w2_bf), const_spec(b2),
            const_spec(w3_bf), const_spec(b3),
            const_spec(wo_bf), const_spec(bo_p),
        ],
        out_specs=pl.BlockSpec((tb, n_out_pad), lambda i: (i, 0)),
        compiler_params=pltpu.CompilerParams(
            dimension_semantics=("parallel",)),              # shards across TCs on v7x
    )(x_bf, w1_bf, b1, w2_bf, b2, w3_bf, b3, wo_bf, bo_p)

    return out[:batch, :n_out]


def init_params(key):
    """Deterministic init mimicking PyTorch Linear default (uniform +/- 1/sqrt(fan_in))."""
    sizes = [FUNCTION_CONFIG["obs_dim"]] + HIDDEN_SIZES + [FUNCTION_CONFIG["n_discrete"]]
    params = []
    for fan_in, fan_out in zip(sizes[:-1], sizes[1:]):
        key, kw, kb = jax.random.split(key, 3)
        bound = 1.0 / jnp.sqrt(jnp.asarray(fan_in, jnp.float32))
        w = jax.random.uniform(kw, (fan_in, fan_out), jnp.float32, -bound, bound)
        b = jax.random.uniform(kb, (1, fan_out), jnp.float32, -bound, bound)
        params.append((w, b))
    return params


def reference_forward(x, params):
    h = x
    for w, b in params[:-1]:
        h = jnp.maximum(h @ w + b, 0.0)
    wo, bo = params[-1]
    return jax.nn.log_softmax(h @ wo + bo, axis=-1)


if __name__ == "__main__":
    key = jax.random.PRNGKey(0)
    key, kx = jax.random.split(key)
    batch = 8
    x = jax.random.normal(kx, (batch, FUNCTION_CONFIG["obs_dim"]), jnp.float32)

    params = init_params(key)

    # Small-batch path (single grid step).
    out = policy_network_forward(x, params)
    out = jax.block_until_ready(out)
    ref = reference_forward(x, params)
    assert out.shape == (batch, FUNCTION_CONFIG["n_discrete"])
    # bf16 matmul inputs with f32 accumulation -> loosened tolerance vs f32 reference.
    assert jnp.allclose(out, ref, atol=5e-2, rtol=5e-2)
    # log_softmax rows should sum (in prob space) to ~1.
    assert jnp.allclose(jnp.sum(jnp.exp(out), axis=-1), 1.0, atol=1e-5)

    # Exercise the multi-step grid + batch-padding path with a small block size.
    key, kx2 = jax.random.split(key)
    batch2 = 300
    x2 = jax.random.normal(kx2, (batch2, FUNCTION_CONFIG["obs_dim"]), jnp.float32)
    out2 = jax.block_until_ready(policy_network_forward(x2, params, block_batch=128))
    ref2 = reference_forward(x2, params)
    assert out2.shape == (batch2, FUNCTION_CONFIG["n_discrete"])
    assert jnp.allclose(out2, ref2, atol=5e-2, rtol=5e-2)
    assert jnp.allclose(jnp.sum(jnp.exp(out2), axis=-1), 1.0, atol=1e-5)

    print("KERNEL_OK")
</pallas_src>

<mosaic_0001>
module attributes {stable_mosaic.version = 11 : i64} {
  func.func @_policy_kernel(%arg0: i32, %arg1: memref<8x16xbf16, #tpu.memory_space<vmem>>, %arg2: memref<16x256xbf16, #tpu.memory_space<vmem>>, %arg3: memref<1x256xf32, #tpu.memory_space<vmem>>, %arg4: memref<256x256xbf16, #tpu.memory_space<vmem>>, %arg5: memref<1x256xf32, #tpu.memory_space<vmem>>, %arg6: memref<256x128xbf16, #tpu.memory_space<vmem>>, %arg7: memref<1x128xf32, #tpu.memory_space<vmem>>, %arg8: memref<128x128xbf16, #tpu.memory_space<vmem>>, %arg9: memref<1x128xf32, #tpu.memory_space<vmem>>, %arg10: memref<8x128xf32, #tpu.memory_space<vmem>>) attributes {dimension_semantics = [#tpu.dimension_semantics<parallel>], iteration_bounds = array<i64: 1>, scalar_prefetch = 0 : i64, scratch_operands = 0 : i64, tpu.core_type = #tpu.core_type<tc>, window_params = [{transform_indices = @transform_0, window_bounds = array<i64: 8, 16>}, {pipeline_mode = #tpu.pipeline_mode<synchronous>, transform_indices = @transform_1, window_bounds = array<i64: 16, 256>}, {pipeline_mode = #tpu.pipeline_mode<synchronous>, transform_indices = @transform_2, window_bounds = array<i64: 1, 256>}, {pipeline_mode = #tpu.pipeline_mode<synchronous>, transform_indices = @transform_3, window_bounds = array<i64: 256, 256>}, {pipeline_mode = #tpu.pipeline_mode<synchronous>, transform_indices = @transform_4, window_bounds = array<i64: 1, 256>}, {pipeline_mode = #tpu.pipeline_mode<synchronous>, transform_indices = @transform_5, window_bounds = array<i64: 256, 128>}, {pipeline_mode = #tpu.pipeline_mode<synchronous>, transform_indices = @transform_6, window_bounds = array<i64: 1, 128>}, {pipeline_mode = #tpu.pipeline_mode<synchronous>, transform_indices = @transform_7, window_bounds = array<i64: 128, 128>}, {pipeline_mode = #tpu.pipeline_mode<synchronous>, transform_indices = @transform_8, window_bounds = array<i64: 1, 128>}, {transform_indices = @transform_9, window_bounds = array<i64: 8, 128>}]} {
    %c0 = arith.constant 0 : index
    %c0_0 = arith.constant 0 : index
    %0 = vector.load %arg1[%c0, %c0_0] : memref<8x16xbf16, #tpu.memory_space<vmem>>, vector<8x16xbf16>
    %c0_1 = arith.constant 0 : index
    %c0_2 = arith.constant 0 : index
    %1 = vector.load %arg2[%c0_1, %c0_2] : memref<16x256xbf16, #tpu.memory_space<vmem>>, vector<16x256xbf16>
    %cst = arith.constant dense<0.000000e+00> : vector<8x256xf32>
    %2 = tpu.matmul %0, %1, %cst {dimension_numbers = #tpu.dot_dimension_numbers<[1], [0], [0], [1], [0, 0, 1, 1], [], []>} : vector<8x16xbf16>, vector<16x256xbf16>, vector<8x256xf32> -> vector<8x256xf32>
    %c0_3 = arith.constant 0 : index
    %c0_4 = arith.constant 0 : index
    %3 = vector.load %arg3[%c0_3, %c0_4] : memref<1x256xf32, #tpu.memory_space<vmem>>, vector<1x256xf32>
    %4 = vector.broadcast %3 : vector<1x256xf32> to vector<8x256xf32>
    %5 = arith.addf %2, %4 : vector<8x256xf32>
    %cst_5 = arith.constant 0.000000e+00 : f32
    %6 = vector.broadcast %cst_5 : f32 to vector<8x256xf32>
    %7 = arith.maximumf %5, %6 : vector<8x256xf32>
    %8 = arith.truncf %7 : vector<8x256xf32> to vector<8x256xbf16>
    %c0_6 = arith.constant 0 : index
    %c0_7 = arith.constant 0 : index
    %9 = vector.load %arg4[%c0_6, %c0_7] : memref<256x256xbf16, #tpu.memory_space<vmem>>, vector<256x256xbf16>
    %cst_8 = arith.constant dense<0.000000e+00> : vector<8x256xf32>
    %10 = tpu.matmul %8, %9, %cst_8 {dimension_numbers = #tpu.dot_dimension_numbers<[1], [0], [0], [1], [0, 0, 1, 1], [], []>} : vector<8x256xbf16>, vector<256x256xbf16>, vector<8x256xf32> -> vector<8x256xf32>
    %c0_9 = arith.constant 0 : index
    %c0_10 = arith.constant 0 : index
    %11 = vector.load %arg5[%c0_9, %c0_10] : memref<1x256xf32, #tpu.memory_space<vmem>>, vector<1x256xf32>
    %12 = vector.broadcast %11 : vector<1x256xf32> to vector<8x256xf32>
    %13 = arith.addf %10, %12 : vector<8x256xf32>
    %cst_11 = arith.constant 0.000000e+00 : f32
    %14 = vector.broadcast %cst_11 : f32 to vector<8x256xf32>
    %15 = arith.maximumf %13, %14 : vector<8x256xf32>
    %16 = arith.truncf %15 : vector<8x256xf32> to vector<8x256xbf16>
    %c0_12 = arith.constant 0 : index
    %c0_13 = arith.constant 0 : index
    %17 = vector.load %arg6[%c0_12, %c0_13] : memref<256x128xbf16, #tpu.memory_space<vmem>>, vector<256x128xbf16>
    %cst_14 = arith.constant dense<0.000000e+00> : vector<8x128xf32>
    %18 = tpu.matmul %16, %17, %cst_14 {dimension_numbers = #tpu.dot_dimension_numbers<[1], [0], [0], [1], [0, 0, 1, 1], [], []>} : vector<8x256xbf16>, vector<256x128xbf16>, vector<8x128xf32> -> vector<8x128xf32>
    %c0_15 = arith.constant 0 : index
    %c0_16 = arith.constant 0 : index
    %19 = vector.load %arg7[%c0_15, %c0_16] : memref<1x128xf32, #tpu.memory_space<vmem>>, vector<1x128xf32>
    %20 = vector.broadcast %19 : vector<1x128xf32> to vector<8x128xf32>
    %21 = arith.addf %18, %20 : vector<8x128xf32>
    %cst_17 = arith.constant 0.000000e+00 : f32
    %22 = vector.broadcast %cst_17 : f32 to vector<8x128xf32>
    %23 = arith.maximumf %21, %22 : vector<8x128xf32>
    %24 = arith.truncf %23 : vector<8x128xf32> to vector<8x128xbf16>
    %c0_18 = arith.constant 0 : index
    %c0_19 = arith.constant 0 : index
    %25 = vector.load %arg8[%c0_18, %c0_19] : memref<128x128xbf16, #tpu.memory_space<vmem>>, vector<128x128xbf16>
    %cst_20 = arith.constant dense<0.000000e+00> : vector<8x128xf32>
    %26 = tpu.matmul %24, %25, %cst_20 {dimension_numbers = #tpu.dot_dimension_numbers<[1], [0], [0], [1], [0, 0, 1, 1], [], []>} : vector<8x128xbf16>, vector<128x128xbf16>, vector<8x128xf32> -> vector<8x128xf32>
    %c0_21 = arith.constant 0 : index
    %c0_22 = arith.constant 0 : index
    %27 = vector.load %arg9[%c0_21, %c0_22] : memref<1x128xf32, #tpu.memory_space<vmem>>, vector<1x128xf32>
    %28 = vector.broadcast %27 : vector<1x128xf32> to vector<8x128xf32>
    %29 = arith.addf %26, %28 : vector<8x128xf32>
    %cst_23 = arith.constant dense<0xFF800000> : vector<8xf32>
    %30 = vector.multi_reduction <maximumf>, %29, %cst_23 [1] : vector<8x128xf32> to vector<8xf32>
    %31 = vector.shape_cast %30 : vector<8xf32> to vector<8x1xf32>
    %32 = vector.broadcast %31 : vector<8x1xf32> to vector<8x128xf32>
    %33 = arith.subf %29, %32 : vector<8x128xf32>
    %34 = math.exp %33 : vector<8x128xf32>
    %cst_24 = arith.constant dense<0.000000e+00> : vector<8xf32>
    %35 = vector.multi_reduction <add>, %34, %cst_24 [1] : vector<8x128xf32> to vector<8xf32>
    %36 = vector.shape_cast %35 : vector<8xf32> to vector<8x1xf32>
    %37 = math.log %36 : vector<8x1xf32>
    %38 = vector.broadcast %37 : vector<8x1xf32> to vector<8x128xf32>
    %39 = arith.subf %33, %38 : vector<8x128xf32>
    %c0_25 = arith.constant 0 : index
    %c0_26 = arith.constant 0 : index
    %40 = vector.load %arg10[%c0_25, %c0_26] : memref<8x128xf32, #tpu.memory_space<vmem>>, vector<8x128xf32>
    tpu.vector_store %arg10[%c0_25, %c0_26], %39 {strides = array<i32>} : memref<8x128xf32, #tpu.memory_space<vmem>>, vector<8x128xf32>,
    return
  }
  func.func @transform_0(%arg0: i32) -> (i32, i32) {
    %c0_i32 = arith.constant 0 : i32
    %c0_i32_0 = arith.constant 0 : i32
    return %arg0, %c0_i32 : i32, i32
  }
  func.func @transform_1(%arg0: i32) -> (i32, i32) {
    %c0_i32 = arith.constant 0 : i32
    %c0_i32_0 = arith.constant 0 : i32
    %c0_i32_1 = arith.constant 0 : i32
    return %c0_i32, %c0_i32_0 : i32, i32
  }
  func.func @transform_2(%arg0: i32) -> (i32, i32) {
    %c0_i32 = arith.constant 0 : i32
    %c0_i32_0 = arith.constant 0 : i32
    %c0_i32_1 = arith.constant 0 : i32
    return %c0_i32, %c0_i32_0 : i32, i32
  }
  func.func @transform_3(%arg0: i32) -> (i32, i32) {
    %c0_i32 = arith.constant 0 : i32
    %c0_i32_0 = arith.constant 0 : i32
    %c0_i32_1 = arith.constant 0 : i32
    return %c0_i32, %c0_i32_0 : i32, i32
  }
  func.func @transform_4(%arg0: i32) -> (i32, i32) {
    %c0_i32 = arith.constant 0 : i32
    %c0_i32_0 = arith.constant 0 : i32
    %c0_i32_1 = arith.constant 0 : i32
    return %c0_i32, %c0_i32_0 : i32, i32
  }
  func.func @transform_5(%arg0: i32) -> (i32, i32) {
    %c0_i32 = arith.constant 0 : i32
    %c0_i32_0 = arith.constant 0 : i32
    %c0_i32_1 = arith.constant 0 : i32
    return %c0_i32, %c0_i32_0 : i32, i32
  }
  func.func @transform_6(%arg0: i32) -> (i32, i32) {
    %c0_i32 = arith.constant 0 : i32
    %c0_i32_0 = arith.constant 0 : i32
    %c0_i32_1 = arith.constant 0 : i32
    return %c0_i32, %c0_i32_0 : i32, i32
  }
  func.func @transform_7(%arg0: i32) -> (i32, i32) {
    %c0_i32 = arith.constant 0 : i32
    %c0_i32_0 = arith.constant 0 : i32
    %c0_i32_1 = arith.constant 0 : i32
    return %c0_i32, %c0_i32_0 : i32, i32
  }
  func.func @transform_8(%arg0: i32) -> (i32, i32) {
    %c0_i32 = arith.constant 0 : i32
    %c0_i32_0 = arith.constant 0 : i32
    %c0_i32_1 = arith.constant 0 : i32
    return %c0_i32, %c0_i32_0 : i32, i32
  }
  func.func @transform_9(%arg0: i32) -> (i32, i32) {
    %c0_i32 = arith.constant 0 : i32
    %c0_i32_0 = arith.constant 0 : i32
    return %arg0, %c0_i32 : i32, i32
  }
}

</mosaic_0001>

<bundles_post_ra>
// kernel: tpu_custom_call.1
= control target key start
LH: loop header
LB: loop body
LE: loop exit
PB: predicated region body
PF: predicated region fallthrough
CT: control target
= control target key end

     0   :  { %14 = vsyncpa [#allocation3], 0  ;;  %s1249_s0 = inlined_call_operand.hbm [shape: bf16[8,16], index: 0, kind: input, shape index: {}]   ;;  %s1250_s1 = inlined_call_operand.hbm [shape: bf16[16,256], index: 1, kind: input, shape index: {}]   ;;  %s1251_s2 = inlined_call_operand.vmem [shape: f32[1,256], index: 2, kind: input, shape index: {}]   ;;  %s1252_s3 = inlined_call_operand.hbm [shape: bf16[256,256], index: 3, kind: input, shape index: {}]   ;;  %s1253_s4 = inlined_call_operand.vmem [shape: f32[1,256], index: 4, kind: input, shape index: {}]   ;;  %s1254_s5 = inlined_call_operand.hbm [shape: bf16[256,128], index: 5, kind: input, shape index: {}]   ;;  %s1255_s6 = inlined_call_operand.vmem [shape: f32[1,128], index: 6, kind: input, shape index: {}]   ;;  %s1256_s7 = inlined_call_operand.hbm [shape: bf16[128,128], index: 7, kind: input, shape index: {}]   ;;  %s1257_s8 = inlined_call_operand.vmem [shape: f32[1,128], index: 8, kind: input, shape index: {}]   ;;  %s1258_s9 = inlined_call_operand.hbm [shape: f32[8,128], index: 9, kind: output, shape index: {}]  }
   0x1   :  { %15 = vsyncpa [#allocation6], 0 }
   0x2   :  { %16 = vsyncpa [#allocation9], 0 }
   0x3   :  { %17 = vsyncpa [#allocation4], 0  ;;  %s1083_s30 = smov [#allocation5]   ;;  %s943_s13 = scalar_lea.hbm %s1250_s1, 256 }
   0x4   :  { %s33_s10 = sshll.u32 %s1083_s30, 4  ;;  %p944_p0 = scmp.ne.s32.totalorder %s1250_s1, %s943_s13  ;;  %s34_s10 = int_to_ptr.vmem [resolvable:$true] %s33_s10 }
   0x5   :  { %p947_p1 = scmp.lt.u32.totalorder %s943_s13, %s1250_s1 }
   0x7   :  { %p949_p2 = pnand %p947_p1, %p944_p0 }
   0x9   :  { %952 = shalt.err (!%p949_p2)
}
   0xa   :  { %s953_s18 = scalar_lea.vmem %s34_s10, 256  ;;  %p958_p4 = scmp.lt.s32.totalorder %s34_s10, %s34_s10 }
   0xb   :  { %p954_p3 = scmp.ne.s32.totalorder %s34_s10, %s953_s18  ;;  %p959_p5 = scmp.lt.s32.totalorder %s953_s18, %s953_s18 }
   0xd   :  { %p960_p6 = por %p959_p5, %p958_p4 }
   0xf   :  { %p961_p7 = pnand %p960_p6, %p954_p3 }
  0x11   :  { %964 = shalt.err (!%p961_p7)
}
  0x12   :  { %s1084_s19 = smov 128   ;;  %s1085_s20 = smov 8  }
  0x13   :  { %39 = dma.hbm_to_vmem [thread:$0]  %s1250_s1, 256, %s34_s10, [#allocation6], %s1084_s19, %s1084_s19, %s1085_s20  }
  0x14   :  { %s1086_s23 = smov [#allocation8]   ;;  %s965_s27 = scalar_lea.hbm %s1254_s5, 2048 }
  0x15   :  { %s61_s24 = sshll.u32 %s1086_s23, 4  ;;  %p966_p8 = scmp.ne.s32.totalorder %s1254_s5, %s965_s27  ;;  %s62_s24 = int_to_ptr.vmem [resolvable:$true] %s61_s24 }
  0x16   :  { %p969_p9 = scmp.lt.u32.totalorder %s965_s27, %s1254_s5 }
  0x18   :  { %p971_p10 = pnand %p969_p9, %p966_p8 }
  0x1a   :  { %974 = shalt.err (!%p971_p10)
}
  0x1b   :  { %s975_s12 = scalar_lea.vmem %s62_s24, 2048  ;;  %p980_p12 = scmp.lt.s32.totalorder %s62_s24, %s62_s24 }
  0x1c   :  { %p976_p11 = scmp.ne.s32.totalorder %s62_s24, %s975_s12  ;;  %p981_p13 = scmp.lt.s32.totalorder %s975_s12, %s975_s12 }
  0x1e   :  { %p982_p0 = por %p981_p13, %p980_p12 }
  0x20   :  { %p983_p1 = pnand %p982_p0, %p976_p11 }
  0x22   :  { %986 = shalt.err (!%p983_p1)
}
  0x23   :  { %s1087_s1 = smov 64   ;;  %s1088_s10 = smov 4  }
  0x24   :  { %67 = dma.hbm_to_vmem [thread:$0]  %s1254_s5, 2048, %s62_s24, [#allocation9], %s1087_s1, %s1087_s1, %s1088_s10  }
  0x25   :  { %s1089_s15 = smov [#allocation2]   ;;  %s1090_s17 = smov [#allocation7]  }
  0x26   :  { %s24_s16 = sshll.u32 %s1089_s15, 4  ;;  %s47_s18 = sshll.u32 %s1090_s17, 4  ;;  %s25_s16 = int_to_ptr.vmem [resolvable:$true] %s24_s16  ;;  %s1176_s18 = int_to_ptr.vmem [resolvable:$true] %s47_s18 }
  0x27   :  { %s987_s23 = scalar_lea.hbm %s1249_s0, 64 }
  0x28   :  { %p988_p2 = scmp.ne.s32.totalorder %s1249_s0, %s987_s23  ;;  %p991_p3 = scmp.lt.u32.totalorder %s987_s23, %s1249_s0 }
  0x2a   :  { %p993_p4 = pnand %p991_p3, %p988_p2 }
  0x2c   :  { %996 = shalt.err (!%p993_p4)
}
  0x2d   :  { %s997_s5 = scalar_lea.vmem %s25_s16, 64  ;;  %p1002_p6 = scmp.lt.s32.totalorder %s25_s16, %s25_s16 }
  0x2e   :  { %p998_p5 = scmp.ne.s32.totalorder %s25_s16, %s997_s5  ;;  %p1003_p7 = scmp.lt.s32.totalorder %s997_s5, %s997_s5 }
  0x30   :  { %p1004_p8 = por %p1003_p7, %p1002_p6 }
  0x32   :  { %p1005_p9 = pnand %p1004_p8, %p998_p5 }
  0x34   :  { %1008 = shalt.err (!%p1005_p9)
}
  0x35   :  { %27 = dma.hbm_to_vmem [thread:$0]  %s1249_s0, 64, %s25_s16, [#allocation3]  }
  0x36   :  { %s1009_s12 = scalar_lea.hbm %s1252_s3, 4096 }
  0x37   :  { %p1010_p10 = scmp.ne.s32.totalorder %s1252_s3, %s1009_s12  ;;  %p1013_p11 = scmp.lt.u32.totalorder %s1009_s12, %s1252_s3 }
  0x39   :  { %p1015_p12 = pnand %p1013_p11, %p1010_p10 }
  0x3b   :  { %1018 = shalt.err (!%p1015_p12)
}
  0x3c   :  { %s1019_s21 = scalar_lea.vmem %s1176_s18, 4096  ;;  %p1024_p0 = scmp.lt.s32.totalorder %s1176_s18, %s1176_s18 }
  0x3d   :  { %p1020_p13 = scmp.ne.s32.totalorder %s1176_s18, %s1019_s21  ;;  %p1025_p1 = scmp.lt.s32.totalorder %s1019_s21, %s1019_s21 }
  0x3f   :  { %p1026_p2 = por %p1025_p1, %p1024_p0 }
  0x41   :  { %p1027_p3 = pnand %p1026_p2, %p1020_p13 }
  0x43   :  { %1030 = shalt.err (!%p1027_p3)
}
  0x44   :  { %53 = dma.hbm_to_vmem [thread:$0]  %s1252_s3, 4096, %s1176_s18, [#allocation6], %s1084_s19, %s1084_s19, %s1085_s20  }
  0x45   :  { %s1091_s22 = smov [#allocation10]   ;;  %s1031_s27 = scalar_lea.hbm %s1256_s7, 1024 }
  0x46   :  { %s75_s23 = sshll.u32 %s1091_s22, 4  ;;  %p1032_p4 = scmp.ne.s32.totalorder %s1256_s7, %s1031_s27  ;;  %s76_s23 = int_to_ptr.vmem [resolvable:$true] %s75_s23 }
  0x47   :  { %p1035_p5 = scmp.lt.u32.totalorder %s1031_s27, %s1256_s7 }
  0x49   :  { %p1037_p6 = pnand %p1035_p5, %p1032_p4 }
  0x4b   :  { %1040 = shalt.err (!%p1037_p6)
}
  0x4c   :  { %s1041_s30 = scalar_lea.vmem %s76_s23, 1024  ;;  %p1046_p8 = scmp.lt.s32.totalorder %s76_s23, %s76_s23 }
  0x4d   :  { %p1042_p7 = scmp.ne.s32.totalorder %s76_s23, %s1041_s30  ;;  %p1047_p9 = scmp.lt.s32.totalorder %s1041_s30, %s1041_s30 }
  0x4f   :  { %p1048_p10 = por %p1047_p9, %p1046_p8 }
  0x51   :  { %p1049_p11 = pnand %p1048_p10, %p1042_p7 }
  0x53   :  { %1052 = shalt.err (!%p1049_p11)
}
  0x54   :  { %81 = dma.hbm_to_vmem [thread:$0]  %s1256_s7, 1024, %s76_s23, [#allocation9], %s1087_s1, %s1087_s1, %s1088_s10  }
  0x55   :  { %1075 = dma.done.wait [#allocation3], 64  }
  0x56   :  { %1076 = vsyncadd [#allocation3], 4294967232 }
  0x57   :  { %1077 = dma.done.wait [#allocation6], 4352  }
  0x58   :  { %1078 = vsyncadd [#allocation6], 4294962944 }
  0x59   :  { %1079 = dma.done.wait [#allocation9], 3072  }
  0x5a   :  { %1080 = vsyncadd [#allocation9], 4294964224  ;;  %v1092_v0 = vmov 0   ;;  %v864_v1 = vld [vmem:[#allocation5 + $0x4] ss:$8 sps:$4 sm:$0xff]   ;;  %vm125_vm0 = vcmask 130048   ;;  %v105_v48 = vlaneseq }
  0x5b   :  { %161 = vmatprep.mubr.bf16.mxu0 %v1092_v0  ;;  %v866_v2 = vld [vmem:[#allocation5] ss:$8 sps:$4 sm:$0xff]   ;;  %v100_v3 = vld [vmem:[#allocation2] sm:$0xf]  ;;  %129 = vmatprep.subr.bf16.mxu0 %v864_v1  ;;  %v869_v5 = vld [vmem:[#allocation7] ss:$8 sps:$4 sm:$0xff]  }
  0x5c   :  { %v867_v4 = vld [vmem:[#allocation7 + $0x4] ss:$8 sps:$4 sm:$0xff]   ;;  %130 = vmatpush1.bf16.msra.mxu0 %v866_v2  ;;  %v870_v6 = vld [vmem:[#allocation7 + $0x14] ss:$8 sps:$4 sm:$0xff]   ;;  %v872_v7 = vld [vmem:[#allocation7 + $0x10] ss:$8 sps:$4 sm:$0xff]  }
  0x5d   :  { %378 = vmatprep.subr.bf16.mxu1 %v867_v4  ;;  %v873_v8 = vld [vmem:[#allocation7 + $0x24] ss:$8 sps:$4 sm:$0xff]   ;;  %v875_v9 = vld [vmem:[#allocation7 + $0x20] ss:$8 sps:$4 sm:$0xff]   ;;  %v876_v10 = vld [vmem:[#allocation7 + $0x34] ss:$8 sps:$4 sm:$0xff]  }
  0x5e   :  { %379 = vmatpush1.bf16.msra.mxu1 %v869_v5  ;;  %v878_v11 = vld [vmem:[#allocation7 + $0x30] ss:$8 sps:$4 sm:$0xff]   ;;  %v879_v12 = vld [vmem:[#allocation7 + $0x44] ss:$8 sps:$4 sm:$0xff]   ;;  %v881_v13 = vld [vmem:[#allocation7 + $0x40] ss:$8 sps:$4 sm:$0xff]  }
  0x5f   :  { %741 = vmatmul.mubr.msk.bf16.vlgmr.msra.gmra.mrb[0].mxu0 %vm125_vm0, %v100_v3  ;;  %380 = vmatprep.subr.bf16.mxu1 %v870_v6  ;;  %v882_v14 = vld [vmem:[#allocation7 + $0x54] ss:$8 sps:$4 sm:$0xff]   ;;  %v884_v15 = vld [vmem:[#allocation7 + $0x50] ss:$8 sps:$4 sm:$0xff]   ;;  %v885_v16 = vld [vmem:[#allocation7 + $0x64] ss:$8 sps:$4 sm:$0xff]  }
  0x60   :  { %v887_v17 = vld [vmem:[#allocation7 + $0x60] ss:$8 sps:$4 sm:$0xff]   ;;  %v888_v18 = vld [vmem:[#allocation7 + $0x74] ss:$8 sps:$4 sm:$0xff]   ;;  %v890_v19 = vld [vmem:[#allocation7 + $0x70] ss:$8 sps:$4 sm:$0xff]  }
  0x61   :  { %v891_v20 = vld [vmem:[#allocation7 + $0x84] ss:$8 sps:$4 sm:$0xff]   ;;  %v893_v21 = vld [vmem:[#allocation7 + $0x80] ss:$8 sps:$4 sm:$0xff]   ;;  %v894_v22 = vld [vmem:[#allocation7 + $0x94] ss:$8 sps:$4 sm:$0xff]  }
  0x62   :  { %381 = vmatpush1.bf16.msra.mxu1 %v872_v7  ;;  %v896_v23 = vld [vmem:[#allocation7 + $0x90] ss:$8 sps:$4 sm:$0xff]   ;;  %v897_v24 = vld [vmem:[#allocation7 + $0xa4] ss:$8 sps:$4 sm:$0xff]   ;;  %v899_v25 = vld [vmem:[#allocation7 + $0xa0] ss:$8 sps:$4 sm:$0xff]  }
  0x63   :  { %382 = vmatprep.subr.bf16.mxu1 %v873_v8  ;;  %v900_v26 = vld [vmem:[#allocation7 + $0xb4] ss:$8 sps:$4 sm:$0xff]   ;;  %v902_v27 = vld [vmem:[#allocation7 + $0xb0] ss:$8 sps:$4 sm:$0xff]   ;;  %v903_v28 = vld [vmem:[#allocation7 + $0xc4] ss:$8 sps:$4 sm:$0xff]  }
  0x64   :  { %v905_v29 = vld [vmem:[#allocation7 + $0xc0] ss:$8 sps:$4 sm:$0xff]   ;;  %v906_v30 = vld [vmem:[#allocation7 + $0xd4] ss:$8 sps:$4 sm:$0xff]   ;;  %v908_v31 = vld [vmem:[#allocation7 + $0xd0] ss:$8 sps:$4 sm:$0xff]  }
  0x65   :  { %v909_v32 = vld [vmem:[#allocation7 + $0xe4] ss:$8 sps:$4 sm:$0xff]   ;;  %v911_v33 = vld [vmem:[#allocation7 + $0xe0] ss:$8 sps:$4 sm:$0xff]   ;;  %v912_v34 = vld [vmem:[#allocation7 + $0xf4] ss:$8 sps:$4 sm:$0xff]  }
  0x66   :  { %383 = vmatpush1.bf16.msra.mxu1 %v875_v9  ;;  %v914_v35 = vld [vmem:[#allocation7 + $0xf0] ss:$8 sps:$4 sm:$0xff]   ;;  %v915_v36 = vld [vmem:[#allocation8 + $0x40] sm:$0xff]   ;;  %v917_v38 = vld [vmem:[#allocation8 + $0x48] sm:$0xff]   ;;  %v106_v49 = vshrl.u32 %v105_v48, 7  ;;  %v1093_v5 = vmov 0.0  }
  0x67   :  { %384 = vmatprep.subr.bf16.mxu1 %v876_v10  ;;  %v916_v37 = vld [vmem:[#allocation8] sm:$0xff]   ;;  %800 = vmatprep.subr.bf16.mxu0 %v915_v36  ;;  %v918_v39 = vld [vmem:[#allocation8 + $0x8] sm:$0xff]   ;;  %v919_v40 = vld [vmem:[#allocation8 + $0x50] sm:$0xff]   ;;  %vm1094_vm1 = vmmov 0  }
  0x68   :  { %801 = vmatpush3.bf16.msra.mxu0 %v916_v37  ;;  %v920_v41 = vld [vmem:[#allocation8 + $0x10] sm:$0xff]   ;;  %v921_v42 = vld [vmem:[#allocation8 + $0x58] sm:$0xff]   ;;  %v923_v44 = vld [vmem:[#allocation8 + $0x60] sm:$0xff]   ;;  %v107_v50 = vsub.s32 0, %v106_v49  ;;  %v111_v52 = vsub.s32 1, %v106_v49 }
  0x69   :  { %802 = vmatprep.subr.bf16.mxu0 %v917_v38  ;;  %v922_v43 = vld [vmem:[#allocation8 + $0x18] sm:$0xff]   ;;  %v924_v45 = vld [vmem:[#allocation8 + $0x20] sm:$0xff]   ;;  %v925_v46 = vld [vmem:[#allocation8 + $0x68] sm:$0xff]  }
  0x6a   :  { %385 = vmatpush1.bf16.msra.mxu1 %v878_v11  ;;  %v926_v47 = vld [vmem:[#allocation8 + $0x28] sm:$0xff]   ;;  %v927_v1 = vld [vmem:[#allocation8 + $0x70] sm:$0xff]   ;;  %v929_v3 = vld [vmem:[#allocation8 + $0x78] sm:$0xff]  }
  0x6b   :  { %386 = vmatprep.subr.bf16.mxu1 %v879_v12  ;;  %v103_v51 = vld [vmem:[%s1251_s2] sm:$0x3]  ;;  %v928_v2 = vld [vmem:[#allocation8 + $0x30] sm:$0xff]   ;;  %v930_v4 = vld [vmem:[#allocation8 + $0x38] sm:$0xff]  }
  0x6c   :  { %803 = vmatpush3.bf16.msra.mxu0 %v918_v39  ;;  %v108_v53 = vrot.slane %v103_v51, %v107_v50  ;;  %v112_v54 = vrot.slane %v103_v51, %v111_v52  ;;  %v206_v6 = vld [vmem:[%s1253_s4] sm:$0x3] }
  0x6d   :  { %804 = vmatprep.subr.bf16.mxu0 %v919_v40  ;;  %v211_v7 = vrot.slane %v206_v6, %v107_v50  ;;  %v215_v8 = vrot.slane %v206_v6, %v111_v52  ;;  %v791_v36 = vld [vmem:[%s1257_s8] ss:$0 sm:$0xff] }
  0x6e   :  { %387 = vmatpush1.bf16.msra.mxu1 %v881_v13 }
  0x6f   :  { %388 = vmatprep.subr.bf16.mxu1 %v882_v14 }
  0x70   :  { %805 = vmatpush3.bf16.msra.mxu0 %v920_v41 }
  0x71   :  { %806 = vmatprep.subr.bf16.mxu0 %v921_v42 }
  0x72   :  { %389 = vmatpush1.bf16.msra.mxu1 %v884_v15 }
  0x73   :  { %390 = vmatprep.subr.bf16.mxu1 %v885_v16 }
  0x74   :  { %807 = vmatpush3.bf16.msra.mxu0 %v922_v43 }
  0x75   :  { %808 = vmatprep.subr.bf16.mxu0 %v923_v44 }
  0x76   :  { %391 = vmatpush1.bf16.msra.mxu1 %v887_v17 }
  0x77   :  { %392 = vmatprep.subr.bf16.mxu1 %v888_v18  ;;  %v931_v18 = vld [vmem:[#allocation10] sm:$0xff]  }
  0x78   :  { %809 = vmatpush3.bf16.msra.mxu0 %v924_v45 }
  0x79   :  { %810 = vmatprep.subr.bf16.mxu0 %v925_v46 }
  0x7a   :  { %393 = vmatpush1.bf16.msra.mxu1 %v890_v19 }
  0x7b   :  { %394 = vmatprep.subr.bf16.mxu1 %v891_v20  ;;  %v932_v20 = vld [vmem:[#allocation10 + $0x8] sm:$0xff]  }
  0x7c   :  { %811 = vmatpush3.bf16.msra.mxu0 %v926_v47 }
  0x7d   :  { %812 = vmatprep.subr.bf16.mxu0 %v927_v1 }
  0x7e   :  { %395 = vmatpush1.bf16.msra.mxu1 %v893_v21  ;;  %v933_v21 = vld [vmem:[#allocation10 + $0x10] sm:$0xff]  }
  0x7f   :  { %396 = vmatprep.subr.bf16.mxu1 %v894_v22  ;;  %v934_v22 = vld [vmem:[#allocation10 + $0x18] sm:$0xff]  }
  0x80   :  { %813 = vmatpush3.bf16.msra.mxu0 %v928_v2 }
  0x81   :  { %814 = vmatprep.subr.bf16.mxu0 %v929_v3 }
  0x82   :  { %397 = vmatpush1.bf16.msra.mxu1 %v896_v23  ;;  %v935_v23 = vld [vmem:[#allocation10 + $0x20] sm:$0xff]  }
  0x83   :  { %398 = vmatprep.subr.bf16.mxu1 %v897_v24  ;;  %v936_v24 = vld [vmem:[#allocation10 + $0x28] sm:$0xff]  }
  0x84   :  { %815 = vmatpush3.bf16.msra.mxu0 %v930_v4 }
  0x85   :  { %831 = vmatprep.subr.bf16.mxu0 %v1093_v5 }
  0x86   :  { %399 = vmatpush1.bf16.msra.mxu1 %v899_v25  ;;  %v937_v25 = vld [vmem:[#allocation10 + $0x30] sm:$0xff]  }
  0x87   :  { %400 = vmatprep.subr.bf16.mxu1 %v900_v26  ;;  %v938_v26 = vld [vmem:[#allocation10 + $0x38] sm:$0xff]  }
  0x8a   :  { %401 = vmatpush1.bf16.msra.mxu1 %v902_v27 }
  0x8b   :  { %402 = vmatprep.subr.bf16.mxu1 %v903_v28  ;;  %v774_v28 = vld [vmem:[%s1255_s6] ss:$0 sm:$0xff]  ;;  %s1095_s6 = smov [#allocation11]  }
  0x8c   :  { %s728_s12 = sshll.u32 %s1095_s6, 4  ;;  %s729_s12 = int_to_ptr.vmem [resolvable:$true] %s728_s12 }
  0x8d   :  { %s1053_s8 = scalar_lea.vmem %s729_s12, 128  ;;  %p1058_p13 = scmp.lt.s32.totalorder %s729_s12, %s729_s12 }
  0x8e   :  { %403 = vmatpush1.bf16.msra.mxu1 %v905_v29  ;;  %p1054_p12 = scmp.ne.s32.totalorder %s729_s12, %s1053_s8  ;;  %p1059_p0 = scmp.lt.s32.totalorder %s1053_s8, %s1053_s8 }
  0x8f   :  { %404 = vmatprep.subr.bf16.mxu1 %v906_v30 }
  0x90   :  { %p1060_p1 = por %p1059_p0, %p1058_p13 }
  0x92   :  { %405 = vmatpush1.bf16.msra.mxu1 %v908_v31  ;;  %p1061_p2 = pnand %p1060_p1, %p1054_p12 }
  0x93   :  { %406 = vmatprep.subr.bf16.mxu1 %v909_v32 }
  0x96   :  { %407 = vmatpush1.bf16.msra.mxu1 %v911_v33 }
  0x97   :  { %408 = vmatprep.subr.bf16.mxu1 %v912_v34 }
  0x9a   :  { %409 = vmatpush1.bf16.msra.mxu1 %v914_v35 }
 0x132   :  { %v163_v55 = vpop.f32.mrb[0].mxu0 }
 0x133   :  { %v164_v56 = vadd.f32 %v163_v55, %v108_v53  ;;  %v165_v57 = vpop.f32.mrb[1].mxu0 }
 0x134   :  { %v166_v58 = vadd.f32 %v165_v57, %v112_v54  ;;  %v167_v59 = vpop.f32.mrb[2].mxu0 }
 0x135   :  { %v170_v60 = vmax.f32 %v164_v56, 0.0  ;;  %v168_v61 = vpop.f32.mrb[3].mxu0 }
 0x136   :  { %v171_v62 = vmax.f32 %v166_v58, 0.0 }
 0x137   :  { %v172_v0 = vpack.c.bf16 %v170_v60, %v170_v60 }
 0x138   :  { %v173_v63 = vpack.c.bf16 %v171_v62, %v171_v62 }
 0x13a   :  { %410 = vmatprep.mubr.bf16.mxu1 %v173_v63 }
 0x13b   :  { %411 = vmatmul.mubr.bf16.vlgmr.msra.gmra.mrb[0].mxu1 %v172_v0 }
 0x20e   :  { %v412_v9 = vpop.f32.mrb[0].mxu1 }
 0x20f   :  { %v413_v10 = vadd.f32 %v412_v9, %v211_v7  ;;  %v414_v11 = vpop.f32.mrb[1].mxu1 }
 0x210   :  { %v415_v12 = vadd.f32 %v414_v11, %v215_v8  ;;  %v416_v13 = vpop.f32.mrb[2].mxu1 }
 0x211   :  { %v419_v14 = vmax.f32 %v413_v10, 0.0  ;;  %v417_v15 = vpop.f32.mrb[3].mxu1 }
 0x212   :  { %v420_v16 = vmax.f32 %v415_v12, 0.0 }
 0x213   :  { %v421_v19 = vpack.c.bf16 %v419_v14, %v419_v14 }
 0x214   :  { %v422_v17 = vpack.c.bf16 %v420_v16, %v420_v16 }
 0x216   :  { %590 = vmatprep.mubr.bf16.mxu0 %v422_v17 }
 0x217   :  { %591 = vmatmul.mubr.bf16.vlgmr.msra.gmra.mrb[4].mxu0 %v421_v19 }
 0x218   :  { %832 = vmatpush3.bf16.msra.mxu0 %v931_v18  ;;  %847 = vmatprep.mubr.msk.bf16.mxu0 %vm1094_vm1, %v1093_v5 }
 0x219   :  { %833 = vmatprep.subr.bf16.mxu0 %v1093_v5 }
 0x21c   :  { %834 = vmatpush3.bf16.msra.mxu0 %v932_v20 }
 0x21d   :  { %835 = vmatprep.subr.bf16.mxu0 %v1093_v5 }
 0x220   :  { %836 = vmatpush3.bf16.msra.mxu0 %v933_v21 }
 0x221   :  { %837 = vmatprep.subr.bf16.mxu0 %v1093_v5 }
 0x224   :  { %838 = vmatpush3.bf16.msra.mxu0 %v934_v22 }
 0x225   :  { %839 = vmatprep.subr.bf16.mxu0 %v1093_v5 }
 0x228   :  { %840 = vmatpush3.bf16.msra.mxu0 %v935_v23 }
 0x229   :  { %841 = vmatprep.subr.bf16.mxu0 %v1093_v5 }
 0x22c   :  { %842 = vmatpush3.bf16.msra.mxu0 %v936_v24 }
 0x22d   :  { %843 = vmatprep.subr.bf16.mxu0 %v1093_v5 }
 0x230   :  { %844 = vmatpush3.bf16.msra.mxu0 %v937_v25 }
 0x231   :  { %845 = vmatprep.subr.bf16.mxu0 %v1093_v5 }
 0x234   :  { %846 = vmatpush3.bf16.msra.mxu0 %v938_v26 }
 0x2ea   :  { %v816_v27 = vpop.f32.mrb[4].mxu0 }
 0x2eb   :  { %v817_v29 = vpop.f32.mrb[5].mxu0 }
 0x2ec   :  { %v818_v30 = vadd.f32 %v817_v29, %v816_v27  ;;  %v819_v31 = vpop.f32.mrb[6].mxu0 }
 0x2ed   :  { %v820_v32 = vpop.f32.mrb[7].mxu0 }
 0x2ee   :  { %v593_v33 = vadd.f32 %v818_v30, %v774_v28 }
 0x2f0   :  { %v598_v34 = vmax.f32 %v593_v33, 0.0 }
 0x2f2   :  { %v599_v35 = vpack.c.bf16 %v598_v34, %v598_v34 }
 0x2f4   :  { %848 = vmatmul.mubr.bf16.vlgmr.msra.gmra.mrb[8].mxu0 %v599_v35 }
 0x3c7   :  { %v705_v37 = vpop.f32.mrb[8].mxu0 }
 0x3c8   :  { %v706_v38 = vadd.f32 %v791_v36, %v705_v37  ;;  %v849_v39 = vpop.f32.mrb[9].mxu0 }
 0x3c9   :  { %v708_v40 = vpop.f32.mrb[10].mxu0 }
 0x3ca   :  { %711 = vmax.xlane.f32.xlu0 %v706_v38  ;;  %v850_v41 = vpop.f32.mrb[11].mxu0 }
 0x457   :  { %v712_v42 = vpop.xlane.xlu0 %711 }
 0x458   :  { %v713_v43 = vsub.f32 %v706_v38, %v712_v42 }
 0x45a   :  { %v714_v44 = vmul.f32 1.442695, %v713_v43 }
 0x45c   :  { %939 = vpow2.f32 %v714_v44 }
 0x466   :  { %v940_v45 = vpop.eup %939 }
 0x467   :  { %716 = vadd.xlane.f32.xlu0 %v940_v45 }
 0x4f4   :  { %v717_v46 = vpop.xlane.xlu0 %716 }
 0x4f5   :  { %941 = vlog2.f32 %v717_v46 }
 0x4ff   :  { %v942_v47 = vpop.eup %941 }
 0x500   :  { %v719_v48 = vmul.f32 0.6931472, %v942_v47 }
 0x502   :  { %v720_v49 = vsub.f32 %v713_v43, %v719_v48 }
 0x504   :  { %721 = vst [vmem:[#allocation11] sm:$0xff] %v720_v49 }
 0x505   :  { %1064 = shalt.err (!%p1061_p2)
}
 0x506   :  { %s1065_s15 = scalar_lea.hbm %s1258_s9, 128 }
 0x507   :  { %p1066_p3 = scmp.ne.s32.totalorder %s1258_s9, %s1065_s15  ;;  %p1069_p4 = scmp.lt.u32.totalorder %s1065_s15, %s1258_s9 }
 0x509   :  { %p1071_p5 = pnand %p1069_p4, %p1066_p3 }
 0x50b   :  { %1074 = shalt.err (!%p1071_p5)
}
 0x50c   :  { %731 = dma.vmem_to_hbm [thread:$0]  %s729_s12, 128, %s1258_s9, [#allocation4]  }
 0x50d   :  { %1081 = dma.done.wait [#allocation4], 128  }
 0x50e   :  { %1082 = vsyncadd [#allocation4], 4294967168 }
 0x50f   :  { %735 = vsyncpa [#allocation3], 1 }
 0x510   :  { %736 = vsyncpa [#allocation6], 1 }
 0x511   :  { %737 = vsyncpa [#allocation9], 1 }
 0x512   :  { %738 = vsyncpa [#allocation4], 1 }

</bundles_post_ra>
